<compile_context>
chip_gen: v6e
topology: v6e:2x2x1
jax: 0.10.0
libtpu: 0.0.40
codegen_flags: <defaults>
</compile_context>

<pallas_src>
import functools

import jax
import jax.numpy as jnp
from jax.experimental import pallas as pl
from jax.experimental.pallas import tpu as pltpu

_LANE = 128


def _round_up(x, m):
    return ((x + m - 1) // m) * m


def _mlp_kernel(x_ref, w1_ref, b1_ref, w2_ref, b2_ref, o_ref, *, matmul_dtype):
    # Layer 1: Linear (MXU, bf16 operands, f32 accumulate) + bias + ReLU in f32.
    x = x_ref[...].astype(matmul_dtype)
    w1 = w1_ref[...].astype(matmul_dtype)
    h = jnp.dot(x, w1, preferred_element_type=jnp.float32)
    h = h + b1_ref[...].astype(jnp.float32)       # (1, hidden) broadcasts over batch tile
    h = jnp.maximum(h, 0.0)                       # ReLU in f32 (VPU)
    # Dropout(p=0.3): identity in eval mode.
    # Layer 2: Linear into the lane-dense (padded) output tile.
    w2 = w2_ref[...].astype(matmul_dtype)
    out = jnp.dot(h.astype(matmul_dtype), w2, preferred_element_type=jnp.float32)
    out = out + b2_ref[...].astype(jnp.float32)
    o_ref[...] = out.astype(o_ref.dtype)


def _vmem_budget_bytes(tb, input_dim, hidden, n_pad, itemsize):
    # Double-buffered x / out tiles + resident weights + f32 intermediates, with headroom.
    act = 2 * 2 * (tb * input_dim + tb * n_pad) * itemsize
    weights = 2 * (input_dim * hidden + hidden + hidden * n_pad + n_pad) * itemsize
    scratch = 4 * tb * (hidden + n_pad)
    total = 2 * (act + weights + scratch)
    return int(min(max(total, 16 * 1024 * 1024), 48 * 1024 * 1024))


def mlp_classifier_forward(x, w1, b1, w2, b2, *, block_b=256,
                           matmul_dtype=jnp.bfloat16):
    """x: (B, input_dim); w1: (input_dim, hidden); b1: (1, hidden) or (hidden,);
    w2: (hidden, output_dim); b2: (1, output_dim) or (output_dim,).
    Returns (B, output_dim) logits (eval-mode forward)."""
    B, input_dim = x.shape
    hidden = w1.shape[1]
    output_dim = w2.shape[1]

    b1 = b1.reshape(1, hidden)
    b2 = b2.reshape(1, output_dim)

    # --- Lane-dense output padding (output_dim -> multiple of 128). ---
    n_pad = _round_up(max(output_dim, _LANE), _LANE)
    if n_pad != output_dim:
        w2p = jnp.zeros((hidden, n_pad), w2.dtype).at[:, :output_dim].set(w2)
        b2p = jnp.zeros((1, n_pad), b2.dtype).at[:, :output_dim].set(b2)
    else:
        w2p, b2p = w2, b2

    # --- Batch tiling: pick TB, pad B so the grid divides evenly. ---
    tb = min(block_b, _round_up(B, 8))
    b_pad = _round_up(B, tb)
    if b_pad != B:
        x = jnp.pad(x, ((0, b_pad - B), (0, 0)))
    grid = (b_pad // tb,)

    vmem_bytes = _vmem_budget_bytes(tb, input_dim, hidden, n_pad, x.dtype.itemsize)

    out_padded = pl.pallas_call(
        functools.partial(_mlp_kernel, matmul_dtype=matmul_dtype),
        out_shape=jax.ShapeDtypeStruct((b_pad, n_pad), x.dtype),
        grid=grid,
        in_specs=[
            pl.BlockSpec((tb, input_dim), lambda i: (i, 0)),       # x: tiled over batch
            pl.BlockSpec((input_dim, hidden), lambda i: (0, 0)),   # w1: resident
            pl.BlockSpec((1, hidden), lambda i: (0, 0)),           # b1: resident
            pl.BlockSpec((hidden, n_pad), lambda i: (0, 0)),       # w2 (padded): resident
            pl.BlockSpec((1, n_pad), lambda i: (0, 0)),            # b2 (padded): resident
        ],
        out_specs=pl.BlockSpec((tb, n_pad), lambda i: (i, 0)),
        compiler_params=pltpu.CompilerParams(
            dimension_semantics=("parallel",),
            vmem_limit_bytes=vmem_bytes,
        ),
    )(x, w1, b1, w2p, b2p)

    # Slice padded lanes / padded batch rows back off before anything downstream
    # (softmax/argmax must never see the zero-padded logit lanes).
    return out_padded[:B, :output_dim]


def init_params(key, input_dim, hidden_dim=128, output_dim=2, dtype=jnp.float32):
    """Deterministic parameter init (Kaiming-uniform-like, matching nn.Linear shapes).
    Weights stored as (in, out) = transpose of PyTorch's (out, in)."""
    k1, k2, k3, k4 = jax.random.split(key, 4)
    lim1 = 1.0 / jnp.sqrt(input_dim)
    lim2 = 1.0 / jnp.sqrt(hidden_dim)
    w1 = jax.random.uniform(k1, (input_dim, hidden_dim), dtype, -lim1, lim1)
    b1 = jax.random.uniform(k2, (1, hidden_dim), dtype, -lim1, lim1)
    w2 = jax.random.uniform(k3, (hidden_dim, output_dim), dtype, -lim2, lim2)
    b2 = jax.random.uniform(k4, (1, output_dim), dtype, -lim2, lim2)
    return w1, b1, w2, b2


def _reference_forward(x, w1, b1, w2, b2, matmul_dtype=jnp.bfloat16):
    """Pure-JAX reference using the same bf16-operand / f32-accumulate recipe."""
    h = jnp.dot(x.astype(matmul_dtype), w1.astype(matmul_dtype),
                preferred_element_type=jnp.float32)
    h = jnp.maximum(h + b1.astype(jnp.float32), 0.0)
    out = jnp.dot(h.astype(matmul_dtype), w2.astype(matmul_dtype),
                  preferred_element_type=jnp.float32)
    return out + b2.astype(jnp.float32)


if __name__ == "__main__":
    key = jax.random.PRNGKey(0)
    kx, kp = jax.random.split(key)

    batch = 8
    input_dim = 32
    hidden_dim = 128
    output_dim = 2

    x = jax.random.normal(kx, (batch, input_dim), jnp.float32)
    w1, b1, w2, b2 = init_params(kp, input_dim, hidden_dim, output_dim)

    out = mlp_classifier_forward(x, w1, b1, w2, b2)
    out = jax.block_until_ready(out)
    assert out.shape == (batch, output_dim)

    # Check against a reference that uses the same bf16-matmul / f32-accumulate path.
    ref_bf16 = _reference_forward(x, w1, b1, w2, b2)
    assert jnp.allclose(out, ref_bf16, atol=1e-2, rtol=1e-2)

    # Sanity check against the pure-f32 forward (loose tolerance for bf16 operands).
    ref_f32 = jnp.maximum(x @ w1 + b1, 0.0) @ w2 + b2
    assert jnp.allclose(out, ref_f32, atol=1e-1, rtol=1e-1)

    print("KERNEL_OK")
</pallas_src>

<mosaic_0001>
module attributes {stable_mosaic.version = 11 : i64} {
  func.func @_mlp_kernel(%arg0: i32, %arg1: memref<8x32xf32, #tpu.memory_space<vmem>>, %arg2: memref<32x128xf32, #tpu.memory_space<vmem>>, %arg3: memref<1x128xf32, #tpu.memory_space<vmem>>, %arg4: memref<128x128xf32, #tpu.memory_space<vmem>>, %arg5: memref<1x128xf32, #tpu.memory_space<vmem>>, %arg6: memref<8x128xf32, #tpu.memory_space<vmem>>) attributes {dimension_semantics = [#tpu.dimension_semantics<parallel>], iteration_bounds = array<i64: 1>, scalar_prefetch = 0 : i64, scratch_operands = 0 : i64, tpu.core_type = #tpu.core_type<tc>, window_params = [{transform_indices = @transform_0, window_bounds = array<i64: 8, 32>}, {pipeline_mode = #tpu.pipeline_mode<synchronous>, transform_indices = @transform_1, window_bounds = array<i64: 32, 128>}, {pipeline_mode = #tpu.pipeline_mode<synchronous>, transform_indices = @transform_2, window_bounds = array<i64: 1, 128>}, {pipeline_mode = #tpu.pipeline_mode<synchronous>, transform_indices = @transform_3, window_bounds = array<i64: 128, 128>}, {pipeline_mode = #tpu.pipeline_mode<synchronous>, transform_indices = @transform_4, window_bounds = array<i64: 1, 128>}, {transform_indices = @transform_5, window_bounds = array<i64: 8, 128>}]} {
    %c0 = arith.constant 0 : index
    %c0_0 = arith.constant 0 : index
    %0 = vector.load %arg1[%c0, %c0_0] : memref<8x32xf32, #tpu.memory_space<vmem>>, vector<8x32xf32>
    %1 = arith.truncf %0 : vector<8x32xf32> to vector<8x32xbf16>
    %c0_1 = arith.constant 0 : index
    %c0_2 = arith.constant 0 : index
    %2 = vector.load %arg2[%c0_1, %c0_2] : memref<32x128xf32, #tpu.memory_space<vmem>>, vector<32x128xf32>
    %3 = arith.truncf %2 : vector<32x128xf32> to vector<32x128xbf16>
    %cst = arith.constant dense<0.000000e+00> : vector<8x128xf32>
    %4 = tpu.matmul %1, %3, %cst {dimension_numbers = #tpu.dot_dimension_numbers<[1], [0], [0], [1], [0, 0, 1, 1], [], []>} : vector<8x32xbf16>, vector<32x128xbf16>, vector<8x128xf32> -> vector<8x128xf32>
    %c0_3 = arith.constant 0 : index
    %c0_4 = arith.constant 0 : index
    %5 = vector.load %arg3[%c0_3, %c0_4] : memref<1x128xf32, #tpu.memory_space<vmem>>, vector<1x128xf32>
    %6 = vector.broadcast %5 : vector<1x128xf32> to vector<8x128xf32>
    %7 = arith.addf %4, %6 : vector<8x128xf32>
    %cst_5 = arith.constant 0.000000e+00 : f32
    %8 = vector.broadcast %cst_5 : f32 to vector<8x128xf32>
    %9 = arith.maximumf %7, %8 : vector<8x128xf32>
    %c0_6 = arith.constant 0 : index
    %c0_7 = arith.constant 0 : index
    %10 = vector.load %arg4[%c0_6, %c0_7] : memref<128x128xf32, #tpu.memory_space<vmem>>, vector<128x128xf32>
    %11 = arith.truncf %10 : vector<128x128xf32> to vector<128x128xbf16>
    %12 = arith.truncf %9 : vector<8x128xf32> to vector<8x128xbf16>
    %cst_8 = arith.constant dense<0.000000e+00> : vector<8x128xf32>
    %13 = tpu.matmul %12, %11, %cst_8 {dimension_numbers = #tpu.dot_dimension_numbers<[1], [0], [0], [1], [0, 0, 1, 1], [], []>} : vector<8x128xbf16>, vector<128x128xbf16>, vector<8x128xf32> -> vector<8x128xf32>
    %c0_9 = arith.constant 0 : index
    %c0_10 = arith.constant 0 : index
    %14 = vector.load %arg5[%c0_9, %c0_10] : memref<1x128xf32, #tpu.memory_space<vmem>>, vector<1x128xf32>
    %15 = vector.broadcast %14 : vector<1x128xf32> to vector<8x128xf32>
    %16 = arith.addf %13, %15 : vector<8x128xf32>
    %c0_11 = arith.constant 0 : index
    %c0_12 = arith.constant 0 : index
    %17 = vector.load %arg6[%c0_11, %c0_12] : memref<8x128xf32, #tpu.memory_space<vmem>>, vector<8x128xf32>
    tpu.vector_store %arg6[%c0_11, %c0_12], %16 {strides = array<i32>} : memref<8x128xf32, #tpu.memory_space<vmem>>, vector<8x128xf32>,
    return
  }
  func.func @transform_0(%arg0: i32) -> (i32, i32) {
    %c0_i32 = arith.constant 0 : i32
    %c0_i32_0 = arith.constant 0 : i32
    return %arg0, %c0_i32 : i32, i32
  }
  func.func @transform_1(%arg0: i32) -> (i32, i32) {
    %c0_i32 = arith.constant 0 : i32
    %c0_i32_0 = arith.constant 0 : i32
    %c0_i32_1 = arith.constant 0 : i32
    return %c0_i32, %c0_i32_0 : i32, i32
  }
  func.func @transform_2(%arg0: i32) -> (i32, i32) {
    %c0_i32 = arith.constant 0 : i32
    %c0_i32_0 = arith.constant 0 : i32
    %c0_i32_1 = arith.constant 0 : i32
    return %c0_i32, %c0_i32_0 : i32, i32
  }
  func.func @transform_3(%arg0: i32) -> (i32, i32) {
    %c0_i32 = arith.constant 0 : i32
    %c0_i32_0 = arith.constant 0 : i32
    %c0_i32_1 = arith.constant 0 : i32
    return %c0_i32, %c0_i32_0 : i32, i32
  }
  func.func @transform_4(%arg0: i32) -> (i32, i32) {
    %c0_i32 = arith.constant 0 : i32
    %c0_i32_0 = arith.constant 0 : i32
    %c0_i32_1 = arith.constant 0 : i32
    return %c0_i32, %c0_i32_0 : i32, i32
  }
  func.func @transform_5(%arg0: i32) -> (i32, i32) {
    %c0_i32 = arith.constant 0 : i32
    %c0_i32_0 = arith.constant 0 : i32
    return %arg0, %c0_i32 : i32, i32
  }
}

</mosaic_0001>

<bundles_post_ra>
// kernel: tpu_custom_call.1
= control target key start
LH: loop header
LB: loop body
LE: loop exit
PB: predicated region body
PF: predicated region fallthrough
CT: control target
= control target key end

     0   :  { %10 = vsyncpa [#allocation3], 0  ;;  %s403_s0 = inlined_call_operand.hbm [shape: f32[8,32], index: 0, kind: input, shape index: {}]   ;;  %s404_s1 = inlined_call_operand.hbm [shape: f32[32,128], index: 1, kind: input, shape index: {}]   ;;  %s405_s2 = inlined_call_operand.vmem [shape: f32[1,128], index: 2, kind: input, shape index: {}]   ;;  %s406_s3 = inlined_call_operand.hbm [shape: f32[128,128], index: 3, kind: input, shape index: {}]   ;;  %s407_s4 = inlined_call_operand.vmem [shape: f32[1,128], index: 4, kind: input, shape index: {}]   ;;  %s408_s5 = inlined_call_operand.hbm [shape: f32[8,128], index: 5, kind: output, shape index: {}]  }
   0x1   :  { %11 = vsyncpa [#allocation6], 0 }
   0x2   :  { %12 = vsyncpa [#allocation4], 0  ;;  %s347_s18 = smov [#allocation5]  }
   0x3   :  { %s28_s19 = sshll.u32 %s347_s18, 4  ;;  %s29_s19 = int_to_ptr.vmem [resolvable:$true] %s28_s19 }
   0x4   :  { %s269_s20 = scalar_lea.vmem %s29_s19, 512  ;;  %p274_p1 = scmp.lt.s32.totalorder %s29_s19, %s29_s19 }
   0x5   :  { %p270_p0 = scmp.ne.s32.totalorder %s29_s19, %s269_s20  ;;  %p275_p2 = scmp.lt.s32.totalorder %s269_s20, %s269_s20 }
   0x7   :  { %p276_p3 = por %p275_p2, %p274_p1 }
   0x9   :  { %p277_p4 = pnand %p276_p3, %p270_p0 }
   0xb   :  { %280 = shalt.err (!%p277_p4)
}
   0xc   :  { %s348_s21 = smov 128   ;;  %s349_s22 = smov 8  }
   0xd   :  { %34 = dma.hbm_to_vmem [thread:$0]  %s404_s1, 512, %s29_s19, [#allocation6], %s348_s21, %s348_s21, %s349_s22  }
   0xe   :  { %s350_s25 = smov [#allocation2]   ;;  %s351_s27 = smov [#allocation7]  }
   0xf   :  { %s19_s26 = sshll.u32 %s350_s25, 4  ;;  %s42_s28 = sshll.u32 %s351_s27, 4  ;;  %s20_s26 = int_to_ptr.vmem [resolvable:$true] %s19_s26  ;;  %s43_s28 = int_to_ptr.vmem [resolvable:$true] %s42_s28 }
  0x10   :  { %s289_s29 = scalar_lea.vmem %s20_s26, 128  ;;  %p294_p6 = scmp.lt.s32.totalorder %s20_s26, %s20_s26 }
  0x11   :  { %p290_p5 = scmp.ne.s32.totalorder %s20_s26, %s289_s29  ;;  %p295_p7 = scmp.lt.s32.totalorder %s289_s29, %s289_s29 }
  0x13   :  { %p296_p8 = por %p295_p7, %p294_p6 }
  0x15   :  { %p297_p9 = pnand %p296_p8, %p290_p5 }
  0x17   :  { %300 = shalt.err (!%p297_p9)
}
  0x18   :  { %22 = dma.hbm_to_vmem [thread:$0]  %s403_s0, 128, %s20_s26, [#allocation3]  }
  0x19   :  { %s309_s7 = scalar_lea.vmem %s43_s28, 2048  ;;  %p314_p11 = scmp.lt.s32.totalorder %s43_s28, %s43_s28 }
  0x1a   :  { %p310_p10 = scmp.ne.s32.totalorder %s43_s28, %s309_s7  ;;  %p315_p12 = scmp.lt.s32.totalorder %s309_s7, %s309_s7 }
  0x1c   :  { %p316_p13 = por %p315_p12, %p314_p11 }
  0x1e   :  { %p317_p0 = pnand %p316_p13, %p310_p10 }
  0x20   :  { %320 = shalt.err (!%p317_p0)
}
  0x21   :  { %48 = dma.hbm_to_vmem [thread:$0]  %s406_s3, 2048, %s43_s28, [#allocation6], %s348_s21, %s348_s21, %s349_s22  }
  0x22   :  { %341 = dma.done.wait [#allocation3], 128  }
  0x23   :  { %342 = vsyncadd [#allocation3], 4294967168 }
  0x24   :  { %343 = dma.done.wait [#allocation6], 2560  }
  0x25   :  { %344 = vsyncadd [#allocation6], 4294964736  ;;  %v352_v0 = vmov 0.0   ;;  %vm353_vm0 = vmmov 0   ;;  %v65_v1 = vld [vmem:[#allocation5 + $0x10] sm:$0xff]  ;;  %v66_v2 = vld [vmem:[#allocation5 + $0x18] sm:$0xff] }
  0x26   :  { %225 = vmatprep.subr.bf16.mxu0 %v352_v0  ;;  %229 = vmatprep.mubr.msk.bf16.mxu0 %vm353_vm0, %v352_v0  ;;  %v63_v3 = vld [vmem:[#allocation5] sm:$0xff]  ;;  %v68_v4 = vpack.c.bf16 %v66_v2, %v65_v1  ;;  %v64_v5 = vld [vmem:[#allocation5 + $0x8] sm:$0xff]  ;;  %v135_v6 = vld [vmem:[#allocation7 + $0x70] sm:$0xff]  ;;  %vm76_vm1 = vcmask 261120   ;;  %s354_s11 = smov [#allocation8]  }
  0x27   :  { %233 = vmatprep.subr.bf16.mxu1 %v352_v0  ;;  %249 = vmatprep.mubr.msk.bf16.mxu1 %vm353_vm0, %v352_v0  ;;  %v136_v7 = vld [vmem:[#allocation7 + $0x78] sm:$0xff]  ;;  %v133_v8 = vld [vmem:[#allocation7 + $0x60] sm:$0xff]  ;;  %v134_v9 = vld [vmem:[#allocation7 + $0x68] sm:$0xff]  ;;  %v67_v10 = vpack.c.bf16 %v64_v5, %v63_v3  ;;  %s200_s12 = sshll.u32 %s354_s11, 4  ;;  %s201_s12 = int_to_ptr.vmem [resolvable:$true] %s200_s12 }
  0x28   :  { %226 = vmatpush3.bf16.msra.mxu0 %v68_v4  ;;  %v61_v11 = vld [vmem:[#allocation2] sm:$0xff]  ;;  %v144_v12 = vpack.c.bf16 %v136_v7, %v135_v6  ;;  %v143_v13 = vpack.c.bf16 %v134_v9, %v133_v8  ;;  %v131_v15 = vld [vmem:[#allocation7 + $0x50] sm:$0xff]  ;;  %v129_v18 = vld [vmem:[#allocation7 + $0x40] sm:$0xff]  ;;  %p326_p2 = scmp.lt.s32.totalorder %s201_s12, %s201_s12 }
  0x29   :  { %227 = vmatprep.subr.bf16.mxu0 %v352_v0  ;;  %v62_v14 = vpack.c.bf16 %v61_v11, %v61_v11  ;;  %v132_v16 = vld [vmem:[#allocation7 + $0x58] sm:$0xff]  ;;  %v130_v19 = vld [vmem:[#allocation7 + $0x48] sm:$0xff]  ;;  %v127_v21 = vld [vmem:[#allocation7 + $0x30] sm:$0xff] }
  0x2a   :  { %234 = vmatpush3.bf16.msra.mxu1 %v144_v12  ;;  %v142_v17 = vpack.c.bf16 %v132_v16, %v131_v15  ;;  %v141_v20 = vpack.c.bf16 %v130_v19, %v129_v18  ;;  %v128_v22 = vld [vmem:[#allocation7 + $0x38] sm:$0xff]  ;;  %v125_v24 = vld [vmem:[#allocation7 + $0x20] sm:$0xff]  ;;  %v126_v25 = vld [vmem:[#allocation7 + $0x28] sm:$0xff] }
  0x2b   :  { %235 = vmatprep.subr.bf16.mxu1 %v352_v0  ;;  %v140_v23 = vpack.c.bf16 %v128_v22, %v127_v21  ;;  %v139_v26 = vpack.c.bf16 %v126_v25, %v125_v24  ;;  %v123_v27 = vld [vmem:[#allocation7 + $0x10] sm:$0xff]  ;;  %v124_v28 = vld [vmem:[#allocation7 + $0x18] sm:$0xff]  ;;  %v121_v30 = vld [vmem:[#allocation7] sm:$0xff] }
  0x2c   :  { %228 = vmatpush3.bf16.msra.mxu0 %v67_v10  ;;  %v138_v29 = vpack.c.bf16 %v124_v28, %v123_v27  ;;  %v122_v31 = vld [vmem:[#allocation7 + $0x8] sm:$0xff]  ;;  %v210_v33 = vld [vmem:[%s405_s2] ss:$0 sm:$0xff]  ;;  %s321_s2 = scalar_lea.vmem %s201_s12, 128 }
  0x2d   :  { %v137_v32 = vpack.c.bf16 %v122_v31, %v121_v30  ;;  %v212_v41 = vld [vmem:[%s407_s4] ss:$0 sm:$0xff]  ;;  %p322_p1 = scmp.ne.s32.totalorder %s201_s12, %s321_s2  ;;  %p327_p3 = scmp.lt.s32.totalorder %s321_s2, %s321_s2 }
  0x2e   :  { %236 = vmatpush3.bf16.msra.mxu1 %v143_v13 }
  0x2f   :  { %230 = vmatmul.mubr.msk.bf16.vlgmr.msra.gmra.mxu0 %vm76_vm1, %v62_v14  ;;  %237 = vmatprep.subr.bf16.mxu1 %v352_v0  ;;  %p328_p4 = por %p327_p3, %p326_p2 }
  0x31   :  { %p329_p5 = pnand %p328_p4, %p322_p1 }
  0x32   :  { %238 = vmatpush3.bf16.msra.mxu1 %v142_v17 }
  0x33   :  { %239 = vmatprep.subr.bf16.mxu1 %v352_v0 }
  0x36   :  { %240 = vmatpush3.bf16.msra.mxu1 %v141_v20 }
  0x37   :  { %241 = vmatprep.subr.bf16.mxu1 %v352_v0 }
  0x3a   :  { %242 = vmatpush3.bf16.msra.mxu1 %v140_v23 }
  0x3b   :  { %243 = vmatprep.subr.bf16.mxu1 %v352_v0 }
  0x3e   :  { %244 = vmatpush3.bf16.msra.mxu1 %v139_v26 }
  0x3f   :  { %245 = vmatprep.subr.bf16.mxu1 %v352_v0 }
  0x42   :  { %246 = vmatpush3.bf16.msra.mxu1 %v138_v29 }
  0x43   :  { %247 = vmatprep.subr.bf16.mxu1 %v352_v0 }
  0x46   :  { %248 = vmatpush3.bf16.msra.mxu1 %v137_v32 }
  0xef   :  { %v114_v34 = vpop.f32.mrf.mxu0 }
  0xf0   :  { %v115_v35 = vadd.f32 %v210_v33, %v114_v34 }
  0xf1   :  { %v231_v36 = vpop.f32.mrf.mxu0 }
  0xf2   :  { %v120_v37 = vmax.f32 %v115_v35, 0.0 }
  0xf3   :  { %v117_v38 = vpop.f32.mrf.mxu0 }
  0xf4   :  { %v145_v39 = vpack.c.bf16 %v120_v37, %v120_v37 }
  0xf5   :  { %v232_v40 = vpop.f32.mrf.mxu0 }
  0xf6   :  { %250 = vmatmul.mubr.bf16.vlgmr.msra.gmra.mxu1 %v145_v39 }
 0x1b6   :  { %v187_v42 = vpop.f32.mrf.mxu1 }
 0x1b7   :  { %v188_v43 = vadd.f32 %v212_v41, %v187_v42 }
 0x1b8   :  { %v251_v44 = vpop.f32.mrf.mxu1 }
 0x1b9   :  { %193 = vst [vmem:[#allocation8] sm:$0xff] %v188_v43 }
 0x1ba   :  { %v190_v45 = vpop.f32.mrf.mxu1 }
 0x1bb   :  { %332 = shalt.err (!%p329_p5)
}
 0x1bc   :  { %203 = dma.vmem_to_hbm [thread:$0]  %s201_s12, 128, %s408_s5, [#allocation4]   ;;  %v252_v46 = vpop.f32.mrf.mxu1 }
 0x1bd   :  { %345 = dma.done.wait [#allocation4], 128  }
 0x1be   :  { %346 = vsyncadd [#allocation4], 4294967168 }
 0x1bf   :  { %207 = vsyncpa [#allocation3], 1 }
 0x1c0   :  { %208 = vsyncpa [#allocation6], 1 }
 0x1c1   :  { %209 = vsyncpa [#allocation4], 1 }

</bundles_post_ra>
